<compile_context>
chip_gen: v6e
topology: v6e:2x2x1
jax: 0.10.0
libtpu: 0.0.40
codegen_flags: <defaults>
</compile_context>

<pallas_src>
import functools

import jax
import jax.numpy as jnp
from jax.experimental import pallas as pl
from jax.experimental.pallas import tpu as pltpu

IN_DIM = 64        # size_in  (x channels)
HID_DIM = 256      # dim      (ResnetBlockFC size_h == size_out)
OUT_DIM = 16       # out_dim  (latent size of each head)
HEAD_PAD = 128     # fused mean|logvar head padded to one full 128-lane block
TILE_B = 256       # default batch tile (rows per grid step)

_BF16 = jnp.bfloat16


def _round_up(n, m):
    return ((n + m - 1) // m) * m


# --------------------------------- kernel ------------------------------------

def latent_encoder_kernel(x_ref, w0_ref, b0_ref, w1_ref, b1_ref, ws_ref,
                          wh_ref, bh_ref, out_ref):
    """Fused LetentEncoder forward on one (TILE_B, IN_DIM) activation tile.

    ResnetBlockFC (64 -> 256, hidden 256, Linear shortcut because
    size_in != size_out), final leaky_relu(negative_slope=0.2), then the two
    Linear heads fused into one lane-dense matmul:
        out[:, :OUT_DIM]          = fc_mean
        out[:, OUT_DIM:2*OUT_DIM] = fc_logvar
    """
    x = x_ref[...]                                                   # (tb, in) f32

    # net = fc_0(relu(x))
    net = jnp.dot(jnp.maximum(x, 0.0).astype(_BF16), w0_ref[...],
                  preferred_element_type=jnp.float32) + b0_ref[...]  # (tb, hid) f32

    # dx = fc_1(relu(net))
    dx = jnp.dot(jnp.maximum(net, 0.0).astype(_BF16), w1_ref[...],
                 preferred_element_type=jnp.float32) + b1_ref[...]   # (tb, hid) f32

    # shortcut(x)  -- Linear, bias=False (size_in != size_out in this config)
    x_s = jnp.dot(x.astype(_BF16), ws_ref[...],
                  preferred_element_type=jnp.float32)                # (tb, hid) f32

    x_out = x_s + dx
    # final_nl=True in the module: F.leaky_relu(x_out, negative_slope=0.2)
    x_out = jnp.where(x_out >= 0.0, x_out, 0.2 * x_out)

    # fused, lane-padded mean|logvar heads: one MXU push, one unmasked store.
    out_ref[...] = (jnp.dot(x_out.astype(_BF16), wh_ref[...],
                            preferred_element_type=jnp.float32) + bh_ref[...]
                    ).astype(out_ref.dtype)


# ------------------------------ pallas wrapper --------------------------------

def latent_encoder(params, x, tile_b=TILE_B):
    """Returns (mu, logvar), each (B, OUT_DIM) float32."""
    bsz = x.shape[0]
    tb = min(tile_b, _round_up(bsz, 8))          # tile rows, multiple of 8
    bsz_p = _round_up(bsz, tb)                   # padded batch
    xp = x if bsz_p == bsz else jnp.pad(x, ((0, bsz_p - bsz), (0, 0)))
    grid = (bsz_p // tb,)

    # bf16 MXU operands (weights), f32 biases for the VPU epilogue.
    w0 = params['w0'].astype(_BF16)
    w1 = params['w1'].astype(_BF16)
    ws = params['ws'].astype(_BF16)
    wh = params['w_head'].astype(_BF16)
    b0, b1, bh = params['b0'], params['b1'], params['b_head']

    flops = 2 * bsz_p * (IN_DIM * HID_DIM * 2        # fc_0 + shortcut
                         + HID_DIM * HID_DIM         # fc_1
                         + HID_DIM * HEAD_PAD)       # fused heads
    bytes_accessed = (2 * (IN_DIM * HID_DIM * 2 + HID_DIM * HID_DIM
                           + HID_DIM * HEAD_PAD)     # bf16 weights (DMA'd once)
                      + 4 * (2 * HID_DIM + HEAD_PAD)                 # f32 biases
                      + 4 * bsz_p * (IN_DIM + HEAD_PAD))             # x in, head out

    # Activation tiles stream; weights/biases use a constant index_map so they
    # are copied to VMEM once and stay resident for every grid step.
    act_in = pl.BlockSpec((tb, IN_DIM), lambda i: (i, 0))
    resident = lambda shape: pl.BlockSpec(shape, lambda i: (0, 0))

    head = pl.pallas_call(
        latent_encoder_kernel,
        out_shape=jax.ShapeDtypeStruct((bsz_p, HEAD_PAD), jnp.float32),
        grid=grid,
        in_specs=[
            act_in,                              # x
            resident((IN_DIM, HID_DIM)),         # w0
            resident((1, HID_DIM)),              # b0
            resident((HID_DIM, HID_DIM)),        # w1
            resident((1, HID_DIM)),              # b1
            resident((IN_DIM, HID_DIM)),         # ws
            resident((HID_DIM, HEAD_PAD)),       # w_head (fused mean|logvar)
            resident((1, HEAD_PAD)),             # b_head
        ],
        out_specs=pl.BlockSpec((tb, HEAD_PAD), lambda i: (i, 0)),
        compiler_params=pltpu.CompilerParams(
            dimension_semantics=("parallel",)),  # v7x: shard batch tiles on 2 TCs
        cost_estimate=pl.CostEstimate(flops=flops, transcendentals=0,
                                      bytes_accessed=bytes_accessed),
    )(xp, w0, b0, w1, b1, ws, wh, bh)

    mu = head[:bsz, :OUT_DIM]
    logvar = head[:bsz, OUT_DIM:2 * OUT_DIM]
    return mu, logvar


# --------------------------------- params -------------------------------------

def _dense(key, shape, scale=0.1):
    return scale * jax.random.normal(key, shape, dtype=jnp.float32)


def init_params(key):
    ks = jax.random.split(key, 9)
    # Fused + lane-padded head: cols [0:OUT_DIM] = fc_mean, [OUT_DIM:2*OUT_DIM] = fc_logvar.
    wm = _dense(ks[4], (HID_DIM, OUT_DIM))
    wv = _dense(ks[5], (HID_DIM, OUT_DIM))
    bm = _dense(ks[6], (1, OUT_DIM))
    bv = _dense(ks[7], (1, OUT_DIM))
    w_head = jnp.zeros((HID_DIM, HEAD_PAD), jnp.float32)
    w_head = w_head.at[:, :OUT_DIM].set(wm).at[:, OUT_DIM:2 * OUT_DIM].set(wv)
    b_head = jnp.zeros((1, HEAD_PAD), jnp.float32)
    b_head = b_head.at[:, :OUT_DIM].set(bm).at[:, OUT_DIM:2 * OUT_DIM].set(bv)
    # NOTE: torch zero-initializes fc_1.weight; here w1 is NON-zero so the test
    # actually exercises the fc_1 matmul wiring (forward math is identical).
    # If size_in == size_out the torch block has no shortcut Linear (identity);
    # this config (64 -> 256) always has one.
    return {
        'w0': _dense(ks[0], (IN_DIM, HID_DIM)),    # fc_0.weight^T
        'b0': _dense(ks[1], (1, HID_DIM)),         # fc_0.bias
        'w1': _dense(ks[8], (HID_DIM, HID_DIM)),   # fc_1.weight^T
        'b1': _dense(ks[2], (1, HID_DIM)),         # fc_1.bias
        'ws': _dense(ks[3], (IN_DIM, HID_DIM)),    # shortcut.weight^T (no bias)
        'w_head': w_head,
        'b_head': b_head,
    }


# --------------------------- pure-JAX reference --------------------------------

def reference_forward(params, x):
    # Uses the same bf16-cast weights as the kernel so the tolerance check only
    # has to cover activation-cast / accumulation-order rounding.
    bfw = lambda k: params[k].astype(_BF16).astype(jnp.float32)
    net = jnp.maximum(x, 0.0) @ bfw('w0') + params['b0']
    dx = jnp.maximum(net, 0.0) @ bfw('w1') + params['b1']
    x_s = x @ bfw('ws')
    x_out = x_s + dx
    x_out = jnp.where(x_out >= 0.0, x_out, 0.2 * x_out)
    head = x_out @ bfw('w_head') + params['b_head']
    return head[:, :OUT_DIM], head[:, OUT_DIM:2 * OUT_DIM]


# ----------------------------------- main --------------------------------------

if __name__ == "__main__":
    key = jax.random.PRNGKey(0)
    kx1, kx2, kp = jax.random.split(key, 3)
    params = init_params(kp)

    fwd = jax.jit(functools.partial(latent_encoder), static_argnames=("tile_b",))

    # (1) Batched call exercising the grid: 4 pipelined tiles of 128 rows,
    #     weights VMEM-resident across steps.
    B1 = 512
    x1 = jax.random.normal(kx1, (B1, IN_DIM), dtype=jnp.float32)
    mu1, lv1 = fwd(params, x1, tile_b=128)
    jax.block_until_ready((mu1, lv1))
    mr1, lr1 = reference_forward(params, x1)
    assert mu1.shape == (B1, OUT_DIM) and lv1.shape == (B1, OUT_DIM)
    assert bool(jnp.all(jnp.isfinite(mu1))) and bool(jnp.all(jnp.isfinite(lv1)))
    assert bool(jnp.allclose(mu1, mr1, rtol=2e-2, atol=2e-2))
    assert bool(jnp.allclose(lv1, lr1, rtol=2e-2, atol=2e-2))

    # (2) Tiny odd batch -> pad-and-slice path, single grid step.
    B2 = 5
    x2 = jax.random.normal(kx2, (B2, IN_DIM), dtype=jnp.float32)
    mu2, lv2 = fwd(params, x2, tile_b=128)
    jax.block_until_ready((mu2, lv2))
    mr2, lr2 = reference_forward(params, x2)
    assert mu2.shape == (B2, OUT_DIM) and lv2.shape == (B2, OUT_DIM)
    assert bool(jnp.allclose(mu2, mr2, rtol=2e-2, atol=2e-2))
    assert bool(jnp.allclose(lv2, lr2, rtol=2e-2, atol=2e-2))

    print("KERNEL_OK")
</pallas_src>

<mosaic_0001>
module attributes {stable_mosaic.version = 11 : i64} {
  func.func @latent_encoder_kernel(%arg0: i32, %arg1: memref<128x64xf32, #tpu.memory_space<vmem>>, %arg2: memref<64x256xbf16, #tpu.memory_space<vmem>>, %arg3: memref<1x256xf32, #tpu.memory_space<vmem>>, %arg4: memref<256x256xbf16, #tpu.memory_space<vmem>>, %arg5: memref<1x256xf32, #tpu.memory_space<vmem>>, %arg6: memref<64x256xbf16, #tpu.memory_space<vmem>>, %arg7: memref<256x128xbf16, #tpu.memory_space<vmem>>, %arg8: memref<1x128xf32, #tpu.memory_space<vmem>>, %arg9: memref<128x128xf32, #tpu.memory_space<vmem>>) attributes {dimension_semantics = [#tpu.dimension_semantics<parallel>], iteration_bounds = array<i64: 4>, scalar_prefetch = 0 : i64, scratch_operands = 0 : i64, tpu.core_type = #tpu.core_type<tc>, window_params = [{transform_indices = @transform_0, window_bounds = array<i64: 128, 64>}, {pipeline_mode = #tpu.pipeline_mode<synchronous>, transform_indices = @transform_1, window_bounds = array<i64: 64, 256>}, {pipeline_mode = #tpu.pipeline_mode<synchronous>, transform_indices = @transform_2, window_bounds = array<i64: 1, 256>}, {pipeline_mode = #tpu.pipeline_mode<synchronous>, transform_indices = @transform_3, window_bounds = array<i64: 256, 256>}, {pipeline_mode = #tpu.pipeline_mode<synchronous>, transform_indices = @transform_4, window_bounds = array<i64: 1, 256>}, {pipeline_mode = #tpu.pipeline_mode<synchronous>, transform_indices = @transform_5, window_bounds = array<i64: 64, 256>}, {pipeline_mode = #tpu.pipeline_mode<synchronous>, transform_indices = @transform_6, window_bounds = array<i64: 256, 128>}, {pipeline_mode = #tpu.pipeline_mode<synchronous>, transform_indices = @transform_7, window_bounds = array<i64: 1, 128>}, {transform_indices = @transform_8, window_bounds = array<i64: 128, 128>}]} {
    %c0 = arith.constant 0 : index
    %c0_0 = arith.constant 0 : index
    %0 = vector.load %arg1[%c0, %c0_0] : memref<128x64xf32, #tpu.memory_space<vmem>>, vector<128x64xf32>
    %cst = arith.constant 0.000000e+00 : f32
    %1 = vector.broadcast %cst : f32 to vector<128x64xf32>
    %2 = arith.maximumf %0, %1 : vector<128x64xf32>
    %3 = arith.truncf %2 : vector<128x64xf32> to vector<128x64xbf16>
    %c0_1 = arith.constant 0 : index
    %c0_2 = arith.constant 0 : index
    %4 = vector.load %arg2[%c0_1, %c0_2] : memref<64x256xbf16, #tpu.memory_space<vmem>>, vector<64x256xbf16>
    %cst_3 = arith.constant dense<0.000000e+00> : vector<128x256xf32>
    %5 = tpu.matmul %3, %4, %cst_3 {dimension_numbers = #tpu.dot_dimension_numbers<[1], [0], [0], [1], [0, 0, 1, 1], [], []>} : vector<128x64xbf16>, vector<64x256xbf16>, vector<128x256xf32> -> vector<128x256xf32>
    %c0_4 = arith.constant 0 : index
    %c0_5 = arith.constant 0 : index
    %6 = vector.load %arg3[%c0_4, %c0_5] : memref<1x256xf32, #tpu.memory_space<vmem>>, vector<1x256xf32>
    %7 = vector.broadcast %6 : vector<1x256xf32> to vector<128x256xf32>
    %8 = arith.addf %5, %7 : vector<128x256xf32>
    %cst_6 = arith.constant 0.000000e+00 : f32
    %9 = vector.broadcast %cst_6 : f32 to vector<128x256xf32>
    %10 = arith.maximumf %8, %9 : vector<128x256xf32>
    %11 = arith.truncf %10 : vector<128x256xf32> to vector<128x256xbf16>
    %c0_7 = arith.constant 0 : index
    %c0_8 = arith.constant 0 : index
    %12 = vector.load %arg4[%c0_7, %c0_8] : memref<256x256xbf16, #tpu.memory_space<vmem>>, vector<256x256xbf16>
    %cst_9 = arith.constant dense<0.000000e+00> : vector<128x256xf32>
    %13 = tpu.matmul %11, %12, %cst_9 {dimension_numbers = #tpu.dot_dimension_numbers<[1], [0], [0], [1], [0, 0, 1, 1], [], []>} : vector<128x256xbf16>, vector<256x256xbf16>, vector<128x256xf32> -> vector<128x256xf32>
    %c0_10 = arith.constant 0 : index
    %c0_11 = arith.constant 0 : index
    %14 = vector.load %arg5[%c0_10, %c0_11] : memref<1x256xf32, #tpu.memory_space<vmem>>, vector<1x256xf32>
    %15 = vector.broadcast %14 : vector<1x256xf32> to vector<128x256xf32>
    %16 = arith.addf %13, %15 : vector<128x256xf32>
    %17 = arith.truncf %0 : vector<128x64xf32> to vector<128x64xbf16>
    %c0_12 = arith.constant 0 : index
    %c0_13 = arith.constant 0 : index
    %18 = vector.load %arg6[%c0_12, %c0_13] : memref<64x256xbf16, #tpu.memory_space<vmem>>, vector<64x256xbf16>
    %cst_14 = arith.constant dense<0.000000e+00> : vector<128x256xf32>
    %19 = tpu.matmul %17, %18, %cst_14 {dimension_numbers = #tpu.dot_dimension_numbers<[1], [0], [0], [1], [0, 0, 1, 1], [], []>} : vector<128x64xbf16>, vector<64x256xbf16>, vector<128x256xf32> -> vector<128x256xf32>
    %20 = arith.addf %19, %16 : vector<128x256xf32>
    %cst_15 = arith.constant 0.000000e+00 : f32
    %21 = vector.broadcast %cst_15 : f32 to vector<128x256xf32>
    %22 = arith.cmpf oge, %20, %21 : vector<128x256xf32>
    %cst_16 = arith.constant 2.000000e-01 : f32
    %23 = vector.broadcast %cst_16 : f32 to vector<128x256xf32>
    %24 = arith.mulf %23, %20 : vector<128x256xf32>
    %25 = arith.select %22, %20, %24 : vector<128x256xi1>, vector<128x256xf32>
    %26 = arith.truncf %25 : vector<128x256xf32> to vector<128x256xbf16>
    %c0_17 = arith.constant 0 : index
    %c0_18 = arith.constant 0 : index
    %27 = vector.load %arg7[%c0_17, %c0_18] : memref<256x128xbf16, #tpu.memory_space<vmem>>, vector<256x128xbf16>
    %cst_19 = arith.constant dense<0.000000e+00> : vector<128x128xf32>
    %28 = tpu.matmul %26, %27, %cst_19 {dimension_numbers = #tpu.dot_dimension_numbers<[1], [0], [0], [1], [0, 0, 1, 1], [], []>} : vector<128x256xbf16>, vector<256x128xbf16>, vector<128x128xf32> -> vector<128x128xf32>
    %c0_20 = arith.constant 0 : index
    %c0_21 = arith.constant 0 : index
    %29 = vector.load %arg8[%c0_20, %c0_21] : memref<1x128xf32, #tpu.memory_space<vmem>>, vector<1x128xf32>
    %30 = vector.broadcast %29 : vector<1x128xf32> to vector<128x128xf32>
    %31 = arith.addf %28, %30 : vector<128x128xf32>
    %c0_22 = arith.constant 0 : index
    %c0_23 = arith.constant 0 : index
    %32 = vector.load %arg9[%c0_22, %c0_23] : memref<128x128xf32, #tpu.memory_space<vmem>>, vector<128x128xf32>
    tpu.vector_store %arg9[%c0_22, %c0_23], %31 {strides = array<i32>} : memref<128x128xf32, #tpu.memory_space<vmem>>, vector<128x128xf32>,
    return
  }
  func.func @transform_0(%arg0: i32) -> (i32, i32) {
    %c0_i32 = arith.constant 0 : i32
    %c0_i32_0 = arith.constant 0 : i32
    return %arg0, %c0_i32 : i32, i32
  }
  func.func @transform_1(%arg0: i32) -> (i32, i32) {
    %c0_i32 = arith.constant 0 : i32
    %c0_i32_0 = arith.constant 0 : i32
    %c0_i32_1 = arith.constant 0 : i32
    return %c0_i32, %c0_i32_0 : i32, i32
  }
  func.func @transform_2(%arg0: i32) -> (i32, i32) {
    %c0_i32 = arith.constant 0 : i32
    %c0_i32_0 = arith.constant 0 : i32
    %c0_i32_1 = arith.constant 0 : i32
    return %c0_i32, %c0_i32_0 : i32, i32
  }
  func.func @transform_3(%arg0: i32) -> (i32, i32) {
    %c0_i32 = arith.constant 0 : i32
    %c0_i32_0 = arith.constant 0 : i32
    %c0_i32_1 = arith.constant 0 : i32
    return %c0_i32, %c0_i32_0 : i32, i32
  }
  func.func @transform_4(%arg0: i32) -> (i32, i32) {
    %c0_i32 = arith.constant 0 : i32
    %c0_i32_0 = arith.constant 0 : i32
    %c0_i32_1 = arith.constant 0 : i32
    return %c0_i32, %c0_i32_0 : i32, i32
  }
  func.func @transform_5(%arg0: i32) -> (i32, i32) {
    %c0_i32 = arith.constant 0 : i32
    %c0_i32_0 = arith.constant 0 : i32
    %c0_i32_1 = arith.constant 0 : i32
    return %c0_i32, %c0_i32_0 : i32, i32
  }
  func.func @transform_6(%arg0: i32) -> (i32, i32) {
    %c0_i32 = arith.constant 0 : i32
    %c0_i32_0 = arith.constant 0 : i32
    %c0_i32_1 = arith.constant 0 : i32
    return %c0_i32, %c0_i32_0 : i32, i32
  }
  func.func @transform_7(%arg0: i32) -> (i32, i32) {
    %c0_i32 = arith.constant 0 : i32
    %c0_i32_0 = arith.constant 0 : i32
    %c0_i32_1 = arith.constant 0 : i32
    return %c0_i32, %c0_i32_0 : i32, i32
  }
  func.func @transform_8(%arg0: i32) -> (i32, i32) {
    %c0_i32 = arith.constant 0 : i32
    %c0_i32_0 = arith.constant 0 : i32
    return %arg0, %c0_i32 : i32, i32
  }
}

</mosaic_0001>

<bundles_post_ra>
// kernel: latent_encoder.1
= control target key start
LH: loop header
LB: loop body
LE: loop exit
PB: predicated region body
PF: predicated region fallthrough
CT: control target
= control target key end

     0   :  { %s1861_s27 = smov 0   ;;  %s2371_s0 = inlined_call_operand.vmem [shape: f32[512,64], index: 0, kind: input, shape index: {}]   ;;  %s2372_s1 = inlined_call_operand.vmem [shape: bf16[64,256], index: 1, kind: input, shape index: {}]   ;;  %s2373_s2 = inlined_call_operand.vmem [shape: f32[1,256], index: 2, kind: input, shape index: {}]   ;;  %s2374_s3 = inlined_call_operand.vmem [shape: bf16[256,256], index: 3, kind: input, shape index: {}]   ;;  %s2375_s4 = inlined_call_operand.vmem [shape: f32[1,256], index: 4, kind: input, shape index: {}]   ;;  %s2376_s5 = inlined_call_operand.vmem [shape: bf16[64,256], index: 5, kind: input, shape index: {}]   ;;  %s2377_s6 = inlined_call_operand.vmem [shape: bf16[256,128], index: 6, kind: input, shape index: {}]   ;;  %s2378_s7 = inlined_call_operand.vmem [shape: f32[1,128], index: 7, kind: input, shape index: {}]   ;;  %s2379_s8 = inlined_call_operand.vmem [shape: f32[512,128], index: 8, kind: output, shape index: {}]  }
   0x1 LB: > { %s1522_s28 = sadd.s32 4294967295, %s1813_s27   ;;  %p1526_p0 = scmp.ge.s32.totalorder %s1813_s27, 1  ;;  %s1813_s27 = sphi %s1861_s27, %s18_s27  }
   0x2   : > { %p263_p1 = scmp.lt.s32.totalorder %s1813_s27, 5 }
   0x4   : > { %p264_p2 = pnand %p1526_p0, %p263_p1 }
   0x5   : > { %s1527_s9 = sshll.u32 (!%p264_p2), %s1522_s28, 4 }
   0x6   : > { %267 = sbr.rel (%p264_p2) target bundleno = 725 (0x2d5), region = 52  ;;  %p298_p3 = scmp.lt.s32.totalorder (!%p264_p2), %s1527_s9, 63 }
   0xb   : > { %v1719_v0 = vld [vmem:[%s2372_s1 + $0x34] ss:$8 sps:$4 sm:$0xff]   ;;  %v1721_v1 = vld [vmem:[%s2372_s1 + $0x30] ss:$8 sps:$4 sm:$0xff]   ;;  %v1815_v2 = vmov 0   ;;  %s2381_s9 = smov (!%p298_p3, %s1527_s9), 63 }
   0xc   : > { %467 = vmatprep.mubr.bf16.mxu0 %v1815_v2  ;;  %443 = vmatprep.subr.bf16.mxu0 %v1719_v0  ;;  %v1722_v3 = vld [vmem:[%s2372_s1 + $0x24] ss:$8 sps:$4 sm:$0xff]   ;;  %v1724_v4 = vld [vmem:[%s2372_s1 + $0x20] ss:$8 sps:$4 sm:$0xff]   ;;  %v1725_v5 = vld [vmem:[%s2372_s1 + $0x14] ss:$8 sps:$4 sm:$0xff]  }
   0xd   : > { %444 = vmatpush1.bf16.msra.mxu0 %v1721_v1  ;;  %s1528_s18 = sshll.u32 %s2381_s9, 3  ;;  %v1727_v6 = vld [vmem:[%s2372_s1 + $0x10] ss:$8 sps:$4 sm:$0xff]   ;;  %v1733_v7 = vld [vmem:[%s2374_s3 + $0x74] ss:$8 sps:$4 sm:$0xff]   ;;  %vm410_vm0 = vcmask 523264  }
   0xe   : > { %445 = vmatprep.subr.bf16.mxu0 %v1722_v3  ;;  %s1896_s23 = scalar_lea.vmem %s2371_s0, %s1528_s18  ;;  %v1731_v10 = vld [vmem:[%s2374_s3 + $0x70] ss:$8 sps:$4 sm:$0xff]   ;;  %v1728_v11 = vld [vmem:[%s2372_s1 + $0x4] ss:$8 sps:$4 sm:$0xff]   ;;  %1678 = vmatprep.subr.bf16.mxu1 %v1733_v7  ;;  %v1730_v15 = vld [vmem:[%s2372_s1] ss:$8 sps:$4 sm:$0xff]   ;;  %s2334_s16 = scalar_lea.vmem %s2379_s8, %s1528_s18 }
   0xf   : > { %v1902_v8 = vld [vmem:[%s1896_s23] sm:$0xff]  ;;  %v1905_v9 = vld [vmem:[%s1896_s23 + $0x8] sm:$0xff]  ;;  %1694 = vmatpush1.bf16.msra.mxu1 %v1731_v10  ;;  %v1921_v16 = vld [vmem:[%s1896_s23 + $0x10] sm:$0xff] }
  0x10   : > { %v913_v12 = vpack.c.bf16 %v1905_v9, %v1902_v8  ;;  %v326_v13 = vmax.f32 %v1902_v8, 0.0  ;;  %v327_v14 = vmax.f32 %v1905_v9, 0.0  ;;  %v1736_v17 = vld [vmem:[%s2374_s3 + $0x64] ss:$8 sps:$4 sm:$0xff]   ;;  %v1927_v19 = vld [vmem:[%s1896_s23 + $0x18] sm:$0xff]  ;;  %v328_v22 = vmax.f32 %v1921_v16, 0.0 }
  0x11   : > { %446 = vmatpush1.bf16.msra.mxu0 %v1724_v4  ;;  %v1734_v20 = vld [vmem:[%s2374_s3 + $0x60] ss:$8 sps:$4 sm:$0xff]   ;;  %v1739_v21 = vld [vmem:[%s2374_s3 + $0x54] ss:$8 sps:$4 sm:$0xff]   ;;  %1679 = vmatprep.subr.bf16.mxu1 %v1736_v17  ;;  %v329_v23 = vmax.f32 %v1927_v19, 0.0 }
  0x12   : > { %447 = vmatprep.subr.bf16.mxu0 %v1725_v5  ;;  %v342_v18 = vpack.c.bf16 %v327_v14, %v326_v13  ;;  %v1737_v24 = vld [vmem:[%s2374_s3 + $0x50] ss:$8 sps:$4 sm:$0xff]   ;;  %v1742_v25 = vld [vmem:[%s2374_s3 + $0x44] ss:$8 sps:$4 sm:$0xff]   ;;  %v1740_v29 = vld [vmem:[%s2374_s3 + $0x40] ss:$8 sps:$4 sm:$0xff]  }
  0x13   : > { %1695 = vmatpush1.bf16.msra.mxu1 %v1734_v20  ;;  %v1946_v26 = vld [vmem:[%s1896_s23 + $0x20] sm:$0xff]  ;;  %v343_v27 = vpack.c.bf16 %v329_v23, %v328_v22  ;;  %v1949_v28 = vld [vmem:[%s1896_s23 + $0x28] sm:$0xff]  ;;  %v1745_v30 = vld [vmem:[%s2374_s3 + $0x34] ss:$8 sps:$4 sm:$0xff]  }
  0x14   : > { %1680 = vmatprep.subr.bf16.mxu1 %v1739_v21  ;;  %v330_v31 = vmax.f32 %v1946_v26, 0.0  ;;  %v331_v32 = vmax.f32 %v1949_v28, 0.0  ;;  %v1743_v33 = vld [vmem:[%s2374_s3 + $0x30] ss:$8 sps:$4 sm:$0xff]   ;;  %v1971_v36 = vld [vmem:[%s1896_s23 + $0x40] sm:$0xff]  ;;  %v1977_v38 = vld [vmem:[%s1896_s23 + $0x48] sm:$0xff] }
  0x15   : > { %448 = vmatpush1.bf16.msra.mxu0 %v1727_v6  ;;  %v1965_v34 = vld [vmem:[%s1896_s23 + $0x30] sm:$0xff]  ;;  %v1968_v35 = vld [vmem:[%s1896_s23 + $0x38] sm:$0xff]  ;;  %v1748_v37 = vld [vmem:[%s2374_s3 + $0x24] ss:$8 sps:$4 sm:$0xff]   ;;  %v334_v44 = vmax.f32 %v1971_v36, 0.0  ;;  %v335_v46 = vmax.f32 %v1977_v38, 0.0 }
  0x16   : > { %449 = vmatprep.subr.bf16.mxu0 %v1728_v11  ;;  %v1746_v39 = vld [vmem:[%s2374_s3 + $0x20] ss:$8 sps:$4 sm:$0xff]   ;;  %v1751_v40 = vld [vmem:[%s2374_s3 + $0x14] ss:$8 sps:$4 sm:$0xff]   ;;  %v344_v41 = vpack.c.bf16 %v331_v32, %v330_v31  ;;  %v332_v42 = vmax.f32 %v1965_v34, 0.0  ;;  %v333_v43 = vmax.f32 %v1968_v35, 0.0 }
  0x17   : > { %1696 = vmatpush1.bf16.msra.mxu1 %v1737_v24  ;;  %v1749_v45 = vld [vmem:[%s2374_s3 + $0x10] ss:$8 sps:$4 sm:$0xff]   ;;  %v1754_v47 = vld [vmem:[%s2374_s3 + $0x4] ss:$8 sps:$4 sm:$0xff]   ;;  %v1752_v48 = vld [vmem:[%s2374_s3] ss:$8 sps:$4 sm:$0xff]   ;;  %v346_v53 = vpack.c.bf16 %v335_v46, %v334_v44 }
  0x18   : > { %1681 = vmatprep.subr.bf16.mxu1 %v1742_v25  ;;  %v1757_v49 = vld [vmem:[%s2374_s3 + $0xf4] ss:$8 sps:$4 sm:$0xff]   ;;  %v345_v50 = vpack.c.bf16 %v333_v43, %v332_v42  ;;  %v1755_v51 = vld [vmem:[%s2374_s3 + $0xf0] ss:$8 sps:$4 sm:$0xff]   ;;  %v1760_v52 = vld [vmem:[%s2374_s3 + $0xe4] ss:$8 sps:$4 sm:$0xff]  }
  0x19   : > { %450 = vmatpush1.bf16.msra.mxu0 %v1730_v15  ;;  %v1758_v54 = vld [vmem:[%s2374_s3 + $0xe0] ss:$8 sps:$4 sm:$0xff]   ;;  %v2015_v55 = vld [vmem:[%s1896_s23 + $0x50] sm:$0xff]  ;;  %v2018_v56 = vld [vmem:[%s1896_s23 + $0x58] sm:$0xff] }
  0x1a   : > { %800 = vmatprep.subr.bf16.mxu0 %v1733_v7  ;;  %v1763_v57 = vld [vmem:[%s2374_s3 + $0xd4] ss:$8 sps:$4 sm:$0xff]   ;;  %v336_v58 = vmax.f32 %v2015_v55, 0.0  ;;  %v337_v59 = vmax.f32 %v2018_v56, 0.0  ;;  %v1761_v60 = vld [vmem:[%s2374_s3 + $0xd0] ss:$8 sps:$4 sm:$0xff]  }
  0x1b   : > { %1697 = vmatpush1.bf16.msra.mxu1 %v1740_v29  ;;  %v1766_v61 = vld [vmem:[%s2374_s3 + $0xc4] ss:$8 sps:$4 sm:$0xff]   ;;  %v1764_v63 = vld [vmem:[%s2374_s3 + $0xc0] ss:$8 sps:$4 sm:$0xff]   ;;  %v1769_v3 = vld [vmem:[%s2374_s3 + $0xb4] ss:$8 sps:$4 sm:$0xff]  }
  0x1c   : > { %1539 = vmatmul.mubr.msk.bf16.vlgmr.msra.gmra.mxu0 %vm410_vm0, %v342_v18  ;;  %1682 = vmatprep.subr.bf16.mxu1 %v1745_v30  ;;  %v347_v62 = vpack.c.bf16 %v337_v59, %v336_v58  ;;  %v2037_v0 = vld [vmem:[%s1896_s23 + $0x60] sm:$0xff]  ;;  %v2040_v1 = vld [vmem:[%s1896_s23 + $0x68] sm:$0xff]  ;;  %v1767_v6 = vld [vmem:[%s2374_s3 + $0xb0] ss:$8 sps:$4 sm:$0xff]  }
  0x1d   : > { %477 = vmatprep.mubr.bf16.mxu0 %v1815_v2  ;;  %801 = vmatpush1.bf16.msra.mxu0 %v1731_v10  ;;  %v338_v4 = vmax.f32 %v2037_v0, 0.0  ;;  %v339_v5 = vmax.f32 %v2040_v1, 0.0  ;;  %v2053_v10 = vld [vmem:[%s1896_s23 + $0x70] sm:$0xff]  ;;  %v2056_v11 = vld [vmem:[%s1896_s23 + $0x78] sm:$0xff]  ;;  %v1770_v18 = vld [vmem:[%s2374_s3 + $0xa0] ss:$8 sps:$4 sm:$0xff]  }
  0x1e   : > { %802 = vmatprep.subr.bf16.mxu0 %v1736_v17  ;;  %v340_v13 = vmax.f32 %v2053_v10, 0.0  ;;  %v341_v14 = vmax.f32 %v2056_v11, 0.0  ;;  %v1772_v17 = vld [vmem:[%s2374_s3 + $0xa4] ss:$8 sps:$4 sm:$0xff]   ;;  %v1776_v23 = vld [vmem:[%s2374_s3 + $0x80] ss:$8 sps:$4 sm:$0xff]  }
  0x1f   : > { %1698 = vmatpush1.bf16.msra.mxu1 %v1743_v33  ;;  %v348_v7 = vpack.c.bf16 %v339_v5, %v338_v4  ;;  %v1778_v22 = vld [vmem:[%s2374_s3 + $0x84] ss:$8 sps:$4 sm:$0xff]   ;;  %v358_v32 = vld [vmem:[%s2373_s2] sm:$0x3] }
  0x20   : > { %1683 = vmatprep.subr.bf16.mxu1 %v1748_v37  ;;  %v349_v15 = vpack.c.bf16 %v341_v14, %v340_v13  ;;  %v1784_v59 = vld [vmem:[%s2376_s5 + $0x24] ss:$8 sps:$4 sm:$0xff]   ;;  %v1782_v4 = vld [vmem:[%s2376_s5 + $0x20] ss:$8 sps:$4 sm:$0xff]  }
  0x21   : > { %803 = vmatpush1.bf16.msra.mxu0 %v1734_v20  ;;  %v1775_v20 = vld [vmem:[%s2374_s3 + $0x94] ss:$8 sps:$4 sm:$0xff]  }
  0x22   : > { %804 = vmatprep.subr.bf16.mxu0 %v1739_v21  ;;  %v1773_v21 = vld [vmem:[%s2374_s3 + $0x90] ss:$8 sps:$4 sm:$0xff]  }
  0x23   : > { %1699 = vmatpush1.bf16.msra.mxu1 %v1746_v39 }
  0x24   : > { %1540 = vmatmul.mubr.msk.bf16.gmra.mxu0 %vm410_vm0, %v343_v27  ;;  %1684 = vmatprep.subr.bf16.mxu1 %v1751_v40  ;;  %v360_v27 = vlaneseq }
  0x25   : > { %487 = vmatprep.mubr.bf16.mxu0 %v1815_v2  ;;  %805 = vmatpush1.bf16.msra.mxu0 %v1737_v24  ;;  %v1781_v24 = vld [vmem:[%s2376_s5 + $0x34] ss:$8 sps:$4 sm:$0xff]  }
  0x26   : > { %806 = vmatprep.subr.bf16.mxu0 %v1742_v25  ;;  %v1791_v25 = vld [vmem:[%s2377_s6 + $0x78] sm:$0xff]  }
  0x27   : > { %1700 = vmatpush1.bf16.msra.mxu1 %v1749_v45 }
  0x28   : > { %1685 = vmatprep.subr.bf16.mxu1 %v1754_v47 }
  0x29   : > { %807 = vmatpush1.bf16.msra.mxu0 %v1740_v29  ;;  %v2087_v29 = vshrl.u32 %v360_v27, 7 }
  0x2a   : > { %808 = vmatprep.subr.bf16.mxu0 %v1745_v30 }
  0x2b   : > { %1701 = vmatpush1.bf16.msra.mxu1 %v1752_v48  ;;  %v366_v30 = vsub.s32 1, %v2087_v29  ;;  %v362_v31 = vsub.s32 0, %v2087_v29 }
  0x2c   : > { %1541 = vmatmul.mubr.msk.bf16.gmra.mxu0 %vm410_vm0, %v344_v41  ;;  %1686 = vmatprep.subr.bf16.mxu1 %v1757_v49 }
  0x2d   : > { %497 = vmatprep.mubr.bf16.mxu0 %v1815_v2  ;;  %809 = vmatpush1.bf16.msra.mxu0 %v1743_v33 }
  0x2e   : > { %810 = vmatprep.subr.bf16.mxu0 %v1748_v37  ;;  %v2096_v37 = vrot.slane %v358_v32, %v366_v30 }
  0x2f   : > { %1702 = vmatpush2.bf16.msra.mxu1 %v1755_v51 }
  0x30   : > { %1687 = vmatprep.subr.bf16.mxu1 %v1760_v52 }
  0x31   : > { %811 = vmatpush1.bf16.msra.mxu0 %v1746_v39  ;;  %v2100_v39 = vrot.slane %v358_v32, %v362_v31 }
  0x32   : > { %812 = vmatprep.subr.bf16.mxu0 %v1751_v40 }
  0x33   : > { %1703 = vmatpush2.bf16.msra.mxu1 %v1758_v54 }
  0x34   : > { %1542 = vmatmul.mubr.msk.bf16.gmra.mxu0 %vm410_vm0, %v345_v50  ;;  %1688 = vmatprep.subr.bf16.mxu1 %v1763_v57 }
  0x35   : > { %507 = vmatprep.mubr.bf16.mxu0 %v1815_v2  ;;  %813 = vmatpush1.bf16.msra.mxu0 %v1749_v45 }
  0x36   : > { %814 = vmatprep.subr.bf16.mxu0 %v1754_v47 }
  0x37   : > { %1704 = vmatpush2.bf16.msra.mxu1 %v1761_v60 }
  0x38   : > { %1689 = vmatprep.subr.bf16.mxu1 %v1766_v61 }
  0x39   : > { %815 = vmatpush1.bf16.msra.mxu0 %v1752_v48 }
  0x3a   : > { %816 = vmatprep.subr.bf16.mxu0 %v1757_v49 }
  0x3b   : > { %1705 = vmatpush2.bf16.msra.mxu1 %v1764_v63 }
  0x3c   : > { %1543 = vmatmul.mubr.msk.bf16.gmra.mxu0 %vm410_vm0, %v346_v53  ;;  %1690 = vmatprep.subr.bf16.mxu1 %v1769_v3 }
  0x3d   : > { %517 = vmatprep.mubr.bf16.mxu0 %v1815_v2  ;;  %817 = vmatpush2.bf16.msra.mxu0 %v1755_v51 }
  0x3e   : > { %818 = vmatprep.subr.bf16.mxu0 %v1760_v52 }
  0x3f   : > { %1706 = vmatpush2.bf16.msra.mxu1 %v1767_v6 }
  0x40   : > { %1691 = vmatprep.subr.bf16.mxu1 %v1772_v17 }
  0x41   : > { %819 = vmatpush2.bf16.msra.mxu0 %v1758_v54  ;;  %v1779_v54 = vld [vmem:[%s2376_s5 + $0x30] ss:$8 sps:$4 sm:$0xff]  }
  0x42   : > { %820 = vmatprep.subr.bf16.mxu0 %v1763_v57 }
  0x43   : > { %1707 = vmatpush2.bf16.msra.mxu1 %v1770_v18 }
  0x44   : > { %1544 = vmatmul.mubr.msk.bf16.gmra.mxu0 %vm410_vm0, %v347_v62  ;;  %1692 = vmatprep.subr.bf16.mxu1 %v1775_v20 }
  0x45   : > { %527 = vmatprep.mubr.bf16.mxu0 %v1815_v2  ;;  %821 = vmatpush2.bf16.msra.mxu0 %v1761_v60 }
  0x46   : > { %822 = vmatprep.subr.bf16.mxu0 %v1766_v61 }
  0x47   : > { %1708 = vmatpush2.bf16.msra.mxu1 %v1773_v21 }
  0x48   : > { %1693 = vmatprep.subr.bf16.mxu1 %v1778_v22 }
  0x49   : > { %823 = vmatpush2.bf16.msra.mxu0 %v1764_v63 }
  0x4a   : > { %824 = vmatprep.subr.bf16.mxu0 %v1769_v3 }
  0x4b   : > { %1709 = vmatpush2.bf16.msra.mxu1 %v1776_v23 }
  0x4c   : > { %1545 = vmatmul.mubr.msk.bf16.gmra.mxu0 %vm410_vm0, %v348_v7  ;;  %1614 = vmatprep.subr.bf16.mxu1 %v1791_v25  ;;  %v1787_v7 = vld [vmem:[%s2376_s5 + $0x14] ss:$8 sps:$4 sm:$0xff]  }
  0x4d   : > { %537 = vmatprep.mubr.bf16.mxu0 %v1815_v2  ;;  %825 = vmatpush2.bf16.msra.mxu0 %v1767_v6 }
  0x4e   : > { %826 = vmatprep.subr.bf16.mxu0 %v1772_v17 }
  0x51   : > { %827 = vmatpush2.bf16.msra.mxu0 %v1770_v18 }
  0x52   : > { %828 = vmatprep.subr.bf16.mxu0 %v1775_v20  ;;  %v1785_v20 = vld [vmem:[%s2376_s5 + $0x10] ss:$8 sps:$4 sm:$0xff]  }
  0x54   : > { %1546 = vmatmul.mubr.msk.bf16.gmra.mxu0 %vm410_vm0, %v349_v15 }
  0x55   : > { %829 = vmatpush2.bf16.msra.mxu0 %v1773_v21 }
  0x56   : > { %830 = vmatprep.subr.bf16.mxu0 %v1778_v22 }
  0x59   : > { %831 = vmatpush2.bf16.msra.mxu0 %v1776_v23  ;;  %v1790_v23 = vld [vmem:[%s2376_s5 + $0x4] ss:$8 sps:$4 sm:$0xff]  }
  0x5a   : > { %1001 = vmatprep.subr.bf16.mxu0 %v1781_v24 }
  0xdc   : > { %v469_v33 = vpop.f32.mrf.mxu0 }
  0xdd   : > { %v470_v44 = vadd.f32 %v469_v33, %v2100_v39 }
  0xde   : > { %v471_v40 = vpop.f32.mrf.mxu0 }
  0xdf   : > { %v472_v42 = vadd.f32 %v471_v40, %v2096_v37  ;;  %v548_v51 = vmax.f32 %v470_v44, 0.0  ;;  %v1788_v40 = vld [vmem:[%s2376_s5] ss:$8 sps:$4 sm:$0xff]  }
  0xe0   : > { %v473_v41 = vpop.f32.mrf.mxu0 }
  0xe1   : > { %v474_v43 = vadd.f32 %v473_v41, %v2100_v39  ;;  %v549_v49 = vmax.f32 %v472_v42, 0.0 }
  0xe2   : > { %v475_v45 = vpop.f32.mrf.mxu0 }
  0xe3   : > { %v476_v46 = vadd.f32 %v475_v45, %v2096_v37  ;;  %v550_v47 = vmax.f32 %v474_v43, 0.0 }
  0xe4   : > { %v479_v48 = vpop.f32.mrf.mxu0 }
  0xe5   : > { %v551_v50 = vmax.f32 %v476_v46, 0.0  ;;  %v580_v57 = vpack.c.bf16 %v550_v47, %v548_v51  ;;  %v480_v62 = vadd.f32 %v479_v48, %v2100_v39 }
  0xe6   : > { %v481_v52 = vpop.f32.mrf.mxu0 }
  0xe7   : > { %v581_v53 = vpack.c.bf16 %v551_v50, %v549_v49  ;;  %v482_v60 = vadd.f32 %v481_v52, %v2096_v37  ;;  %v552_v15 = vmax.f32 %v480_v62, 0.0 }
  0xe8   : > { %v483_v58 = vpop.f32.mrf.mxu0 }
  0xe9   : > { %v484_v61 = vadd.f32 %v483_v58, %v2100_v39  ;;  %832 = vmatprep.mubr.bf16.mxu0 %v581_v53  ;;  %v553_v13 = vmax.f32 %v482_v60, 0.0 }
  0xea   : > { %v485_v63 = vpop.f32.mrf.mxu0  ;;  %833 = vmatmul.mubr.bf16.vlgmr.msra.gmra.mxu0 %v580_v57 }
  0xeb   : > { %v486_v3 = vadd.f32 %v485_v63, %v2096_v37  ;;  %1002 = vmatpush1.bf16.msra.mxu0 %v1779_v54  ;;  %v554_v5 = vmax.f32 %v484_v61, 0.0 }
  0xec   : > { %v489_v6 = vpop.f32.mrf.mxu0  ;;  %1003 = vmatprep.subr.bf16.mxu0 %v1784_v59 }
  0xed   : > { %v555_v14 = vmax.f32 %v486_v3, 0.0  ;;  %v582_v21 = vpack.c.bf16 %v554_v5, %v552_v15  ;;  %v490_v27 = vadd.f32 %v489_v6, %v2100_v39  ;;  %v1792_v6 = vld [vmem:[%s2377_s6 + $0x38] sm:$0xff]  }
  0xee   : > { %v491_v17 = vpop.f32.mrf.mxu0 }
  0xef   : > { %v583_v18 = vpack.c.bf16 %v555_v14, %v553_v13  ;;  %1004 = vmatpush1.bf16.msra.mxu0 %v1782_v4  ;;  %v492_v24 = vadd.f32 %v491_v17, %v2096_v37  ;;  %v556_v45 = vmax.f32 %v490_v27, 0.0 }
  0xf0   : > { %v493_v22 = vpop.f32.mrf.mxu0  ;;  %1005 = vmatprep.subr.bf16.mxu0 %v1787_v7 }
  0xf1   : > { %v494_v25 = vadd.f32 %v493_v22, %v2100_v39  ;;  %842 = vmatprep.mubr.bf16.mxu0 %v583_v18  ;;  %v557_v43 = vmax.f32 %v492_v24, 0.0  ;;  %v914_v24 = vpack.c.bf16 %v1927_v19, %v1921_v16 }
  0xf2   : > { %v495_v32 = vpop.f32.mrf.mxu0  ;;  %843 = vmatmul.mubr.bf16.gmra.mxu0 %v582_v21 }
  0xf3   : > { %v496_v33 = vadd.f32 %v495_v32, %v2096_v37  ;;  %1006 = vmatpush1.bf16.msra.mxu0 %v1785_v20  ;;  %v558_v41 = vmax.f32 %v494_v25, 0.0 }
  0xf4   : > { %1007 = vmatprep.subr.bf16.mxu0 %v1790_v23  ;;  %v499_v42 = vpop.f32.mrf.mxu0 }
  0xf5   : > { %v559_v44 = vmax.f32 %v496_v33, 0.0  ;;  %v500_v46 = vadd.f32 %v499_v42, %v2100_v39  ;;  %v584_v50 = vpack.c.bf16 %v558_v41, %v556_v45  ;;  %v915_v45 = vpack.c.bf16 %v1949_v28, %v1946_v26 }
  0xf6   : > { %v501_v47 = vpop.f32.mrf.mxu0 }
  0xf7   : > { %v585_v48 = vpack.c.bf16 %v559_v44, %v557_v43  ;;  %1008 = vmatpush1.bf16.msra.mxu0 %v1788_v40  ;;  %v502_v49 = vadd.f32 %v501_v47, %v2096_v37  ;;  %v560_v53 = vmax.f32 %v500_v46, 0.0 }
  0xf8   : > { %v503_v51 = vpop.f32.mrf.mxu0 }
  0xf9   : > { %852 = vmatprep.mubr.bf16.mxu0 %v585_v48  ;;  %v504_v52 = vadd.f32 %v503_v51, %v2100_v39  ;;  %v561_v57 = vmax.f32 %v502_v49, 0.0 }
  0xfa   : > { %853 = vmatmul.mubr.bf16.gmra.mxu0 %v584_v50  ;;  %v505_v54 = vpop.f32.mrf.mxu0 }
  0xfb   : > { %v562_v58 = vmax.f32 %v504_v52, 0.0  ;;  %1025 = vmatprep.mubr.bf16.mxu0 %v1815_v2  ;;  %v506_v59 = vadd.f32 %v505_v54, %v2096_v37 }
  0xfc   : > { %v509_v60 = vpop.f32.mrf.mxu0 }
  0xfd   : > { %v563_v61 = vmax.f32 %v506_v59, 0.0  ;;  %v586_v62 = vpack.c.bf16 %v562_v58, %v560_v53  ;;  %v510_v63 = vadd.f32 %v509_v60, %v2100_v39  ;;  %v916_v60 = vpack.c.bf16 %v1968_v35, %v1965_v34 }
  0xfe   : > { %v511_v3 = vpop.f32.mrf.mxu0 }
  0xff   : > { %v512_v4 = vadd.f32 %v511_v3, %v2096_v37  ;;  %v587_v5 = vpack.c.bf16 %v563_v61, %v561_v57  ;;  %v564_v14 = vmax.f32 %v510_v63, 0.0 }
 0x100   : > { %v513_v7 = vpop.f32.mrf.mxu0 }
 0x101   : > { %v514_v13 = vadd.f32 %v513_v7, %v2100_v39  ;;  %862 = vmatprep.mubr.bf16.mxu1 %v587_v5  ;;  %v565_v17 = vmax.f32 %v512_v4, 0.0 }
 0x102   : > { %1587 = vmatmul.mubr.msk.bf16.vlgmr.msra.gmra.mxu0 %vm410_vm0, %v913_v12  ;;  %v515_v15 = vpop.f32.mrf.mxu0  ;;  %863 = vmatmul.mubr.bf16.vlgmr.msra.gmra.mxu1 %v586_v62 }
 0x103   : > { %v566_v18 = vmax.f32 %v514_v13, 0.0  ;;  %1035 = vmatprep.mubr.bf16.mxu0 %v1815_v2  ;;  %v516_v20 = vadd.f32 %v515_v15, %v2096_v37  ;;  %1615 = vmatpush3.bf16.msra.mxu1 %v1792_v6 }
 0x104   : > { %v519_v21 = vpop.f32.mrf.mxu0 }
 0x105   : > { %v567_v22 = vmax.f32 %v516_v20, 0.0  ;;  %v588_v23 = vpack.c.bf16 %v566_v18, %v564_v14  ;;  %v520_v8 = vadd.f32 %v519_v21, %v2100_v39  ;;  %v1799_v20 = vld [vmem:[%s2377_s6 + $0x58] sm:$0xff]   ;;  %v1802_v21 = vld [vmem:[%s2377_s6 + $0x10] sm:$0xff]  }
 0x106   : > { %v521_v9 = vpop.f32.mrf.mxu0 }
 0x107   : > { %v589_v12 = vpack.c.bf16 %v567_v22, %v565_v17  ;;  %v522_v25 = vadd.f32 %v521_v9, %v2096_v37  ;;  %v568_v33 = vmax.f32 %v520_v8, 0.0  ;;  %v917_v17 = vpack.c.bf16 %v1977_v38, %v1971_v36  ;;  %v1794_v38 = vld [vmem:[%s2377_s6 + $0x30] sm:$0xff]   ;;  %v1803_v22 = vld [vmem:[%s2377_s6 + $0x48] sm:$0xff]   ;;  %v1806_v8 = vld [vmem:[%s2377_s6] sm:$0xff]  }
 0x108   : > { %v523_v27 = vpop.f32.mrf.mxu0  ;;  %v919_v36 = vpack.c.bf16 %v2040_v1, %v2037_v0  ;;  %v920_v0 = vpack.c.bf16 %v2056_v11, %v2053_v10  ;;  %v1797_v1 = vld [vmem:[%s2377_s6 + $0x60] sm:$0xff]   ;;  %v1800_v10 = vld [vmem:[%s2377_s6 + $0x18] sm:$0xff]   ;;  %v1801_v11 = vld [vmem:[%s2377_s6 + $0x50] sm:$0xff]  }
 0x109   : > { %v524_v32 = vadd.f32 %v523_v27, %v2100_v39  ;;  %872 = vmatprep.mubr.bf16.mxu1 %v589_v12  ;;  %v569_v41 = vmax.f32 %v522_v25, 0.0 }
 0x10a   : > { %1588 = vmatmul.mubr.msk.bf16.gmra.mxu0 %vm410_vm0, %v914_v24  ;;  %v525_v40 = vpop.f32.mrf.mxu0  ;;  %873 = vmatmul.mubr.bf16.gmra.mxu1 %v588_v23  ;;  %v1804_v23 = vld [vmem:[%s2377_s6 + $0x8] sm:$0xff]   ;;  %v1805_v24 = vld [vmem:[%s2377_s6 + $0x40] sm:$0xff]  }
 0x10b   : > { %v570_v42 = vmax.f32 %v524_v32, 0.0  ;;  %1045 = vmatprep.mubr.bf16.mxu0 %v1815_v2  ;;  %v526_v16 = vadd.f32 %v525_v40, %v2096_v37 }
 0x10c   : > { %v529_v19 = vpop.f32.mrf.mxu0 }
 0x10d   : > { %v571_v43 = vmax.f32 %v526_v16, 0.0  ;;  %v590_v44 = vpack.c.bf16 %v570_v42, %v568_v33  ;;  %v530_v46 = vadd.f32 %v529_v19, %v2100_v39  ;;  %v628_v19 = vld [vmem:[%s2375_s4] sm:$0x3] }
 0x10e   : > { %v531_v47 = vpop.f32.mrf.mxu0 }
 0x10f   : > { %v591_v48 = vpack.c.bf16 %v571_v43, %v569_v41  ;;  %v532_v49 = vadd.f32 %v531_v47, %v2096_v37  ;;  %v572_v52 = vmax.f32 %v530_v46, 0.0 }
 0x110   : > { %v533_v50 = vpop.f32.mrf.mxu0 }
 0x111   : > { %v534_v51 = vadd.f32 %v533_v50, %v2100_v39  ;;  %882 = vmatprep.mubr.bf16.mxu1 %v591_v48  ;;  %v573_v54 = vmax.f32 %v532_v49, 0.0 }
 0x112   : > { %1589 = vmatmul.mubr.msk.bf16.gmra.mxu0 %vm410_vm0, %v915_v45  ;;  %v535_v53 = vpop.f32.mrf.mxu0  ;;  %883 = vmatmul.mubr.bf16.gmra.mxu1 %v590_v44  ;;  %v2242_v44 = vrot.slane %v628_v19, %v366_v30  ;;  %v2246_v45 = vrot.slane %v628_v19, %v362_v31 }
 0x113   : > { %v574_v57 = vmax.f32 %v534_v51, 0.0  ;;  %1055 = vmatprep.mubr.bf16.mxu0 %v1815_v2  ;;  %v536_v26 = vadd.f32 %v535_v53, %v2096_v37 }
 0x114   : > { %v539_v28 = vpop.f32.mrf.mxu0 }
 0x115   : > { %v575_v58 = vmax.f32 %v536_v26, 0.0  ;;  %v592_v59 = vpack.c.bf16 %v574_v57, %v572_v52  ;;  %v540_v61 = vadd.f32 %v539_v28, %v2100_v39 }
 0x116   : > { %v541_v62 = vpop.f32.mrf.mxu0 }
 0x117   : > { %v593_v63 = vpack.c.bf16 %v575_v58, %v573_v54  ;;  %v542_v3 = vadd.f32 %v541_v62, %v2096_v37  ;;  %v576_v6 = vmax.f32 %v540_v61, 0.0 }
 0x118   : > { %v543_v4 = vpop.f32.mrf.mxu0 }
 0x119   : > { %v544_v5 = vadd.f32 %v543_v4, %v2100_v39  ;;  %892 = vmatprep.mubr.bf16.mxu1 %v593_v63  ;;  %v577_v13 = vmax.f32 %v542_v3, 0.0  ;;  %v918_v39 = vpack.c.bf16 %v2018_v56, %v2015_v55  ;;  %v1795_v55 = vld [vmem:[%s2377_s6 + $0x68] sm:$0xff]  }
 0x11a   : > { %1590 = vmatmul.mubr.msk.bf16.gmra.mxu0 %vm410_vm0, %v916_v60  ;;  %v545_v7 = vpop.f32.mrf.mxu0  ;;  %893 = vmatmul.mubr.bf16.gmra.mxu1 %v592_v59  ;;  %v1796_v56 = vld [vmem:[%s2377_s6 + $0x28] sm:$0xff]  }
 0x11b   : > { %v578_v14 = vmax.f32 %v544_v5, 0.0  ;;  %1065 = vmatprep.mubr.bf16.mxu0 %v1815_v2  ;;  %v546_v34 = vadd.f32 %v545_v7, %v2096_v37  ;;  %v1793_v37 = vld [vmem:[%s2377_s6 + $0x70] sm:$0xff]  }
 0x11c   : > { %1616 = vmatprep.subr.bf16.mxu1 %v1793_v37 }
 0x11d   : > { %v579_v35 = vmax.f32 %v546_v34, 0.0  ;;  %v594_v15 = vpack.c.bf16 %v578_v14, %v576_v6  ;;  %1617 = vmatpush3.bf16.msra.mxu1 %v1794_v38 }
 0x11e   : > { %1618 = vmatprep.subr.bf16.mxu1 %v1795_v55 }
 0x11f   : > { %v595_v18 = vpack.c.bf16 %v579_v35, %v577_v13 }
 0x121   : > { %902 = vmatprep.mubr.bf16.mxu1 %v595_v18  ;;  %1619 = vmatpush3.bf16.msra.mxu1 %v1796_v56 }
 0x122   : > { %1591 = vmatmul.mubr.msk.bf16.gmra.mxu0 %vm410_vm0, %v917_v17  ;;  %903 = vmatmul.mubr.bf16.gmra.mxu1 %v594_v15 }
 0x123   : > { %1075 = vmatprep.mubr.bf16.mxu0 %v1815_v2  ;;  %1620 = vmatprep.subr.bf16.mxu1 %v1797_v1 }
 0x12a   : > { %1592 = vmatmul.mubr.msk.bf16.gmra.mxu0 %vm410_vm0, %v918_v39 }
 0x12b   : > { %1085 = vmatprep.mubr.bf16.mxu0 %v1815_v2 }
 0x132   : > { %1593 = vmatmul.mubr.msk.bf16.gmra.mxu0 %vm410_vm0, %v919_v36 }
 0x133   : > { %1095 = vmatprep.mubr.bf16.mxu0 %v1815_v2  ;;  %v1798_v2 = vld [vmem:[%s2377_s6 + $0x20] sm:$0xff]  }
 0x134   : > { %1621 = vmatpush3.bf16.msra.mxu1 %v1798_v2 }
 0x135   : > { %1622 = vmatprep.subr.bf16.mxu1 %v1799_v20 }
 0x138   : > { %1623 = vmatpush3.bf16.msra.mxu1 %v1800_v10 }
 0x139   : > { %1624 = vmatprep.subr.bf16.mxu1 %v1801_v11 }
 0x13a   : > { %1594 = vmatmul.mubr.msk.bf16.gmra.mxu0 %vm410_vm0, %v920_v0 }
 0x13c   : > { %1625 = vmatpush3.bf16.msra.mxu1 %v1802_v21 }
 0x13d   : > { %1626 = vmatprep.subr.bf16.mxu1 %v1803_v22 }
 0x140   : > { %1627 = vmatpush3.bf16.msra.mxu1 %v1804_v23 }
 0x141   : > { %1628 = vmatprep.subr.bf16.mxu1 %v1805_v24 }
 0x144   : > { %1629 = vmatpush3.bf16.msra.mxu1 %v1806_v8 }
 0x1aa   : > { %v834_v9 = vpop.f32.mrf.mxu0 }
 0x1ab   : > { %v835_v50 = vadd.f32 %v834_v9, %v2246_v45 }
 0x1ac   : > { %v836_v12 = vpop.f32.mrf.mxu0 }
 0x1ad   : > { %v837_v49 = vadd.f32 %v836_v12, %v2242_v44 }
 0x1ae   : > { %v838_v25 = vpop.f32.mrf.mxu0 }
 0x1af   : > { %v839_v53 = vadd.f32 %v838_v25, %v2246_v45 }
 0x1b0   : > { %v840_v27 = vpop.f32.mrf.mxu0 }
 0x1b1   : > { %v841_v31 = vadd.f32 %v840_v27, %v2242_v44 }
 0x1b2   : > { %v844_v32 = vpop.f32.mrf.mxu0 }
 0x1b3   : > { %v845_v6 = vadd.f32 %v844_v32, %v2246_v45 }
 0x1b4   : > { %v846_v33 = vpop.f32.mrf.mxu0 }
 0x1b5   : > { %v847_v4 = vadd.f32 %v846_v33, %v2242_v44 }
 0x1b6   : > { %v848_v40 = vpop.f32.mrf.mxu0 }
 0x1b7   : > { %v849_v34 = vadd.f32 %v848_v40, %v2246_v45 }
 0x1b8   : > { %v850_v41 = vpop.f32.mrf.mxu0 }
 0x1b9   : > { %v851_v55 = vadd.f32 %v850_v41, %v2242_v44 }
 0x1ba   : > { %v2233_v42 = vpop.f32.mrf.mxu0 }
 0x1bb   : > { %v855_v9 = vadd.f32 %v2233_v42, %v2246_v45 }
 0x1bc   : > { %v856_v16 = vpop.f32.mrf.mxu0 }
 0x1bd   : > { %v857_v24 = vadd.f32 %v856_v16, %v2242_v44 }
 0x1be   : > { %v2238_v43 = vpop.f32.mrf.mxu0 }
 0x1bf   : > { %v859_v32 = vadd.f32 %v2238_v43, %v2246_v45 }
 0x1c0   : > { %v2248_v46 = vpop.f32.mrf.mxu0 }
 0x1c2   : > { %v1027_v47 = vpop.f32.mrf.mxu0  ;;  %v2250_v48 = vpop.f32.mrf.mxu1 }
 0x1c3   : > { %v1028_v54 = vadd.f32 %v1027_v47, %v835_v50  ;;  %v861_v50 = vadd.f32 %v2248_v46, %v2242_v44 }
 0x1c4   : > { %v1029_v51 = vpop.f32.mrf.mxu0  ;;  %v2254_v52 = vpop.f32.mrf.mxu1 }
 0x1c5   : > { %v1030_v30 = vadd.f32 %v1029_v51, %v837_v49  ;;  %v1138_v62 = vmul.f32 0.2, %v1028_v54  ;;  %vm1106_vm3 = vcmp.ge.f32.partialorder %v1028_v54, 0.0 }
 0x1c6   : > { %v1031_v57 = vpop.f32.mrf.mxu0  ;;  %v2257_v29 = vpop.f32.mrf.mxu1 }
 0x1c7   : > { %v1032_v26 = vadd.f32 %v1031_v57, %v839_v53  ;;  %v1139_v59 = vmul.f32 0.2, %v1030_v30  ;;  %vm1107_vm2 = vcmp.ge.f32.partialorder %v1030_v30, 0.0  ;;  %v1170_v18 = vsel %vm1106_vm3, %v1028_v54, %v1138_v62 }
 0x1c8   : > { %v1033_v28 = vpop.f32.mrf.mxu0  ;;  %v2260_v58 = vpop.f32.mrf.mxu1 }
 0x1c9   : > { %vm1108_vm1 = vcmp.ge.f32.partialorder %v1032_v26, 0.0  ;;  %v1140_v60 = vmul.f32 0.2, %v1032_v26  ;;  %v1034_v61 = vadd.f32 %v1033_v28, %v841_v31  ;;  %v1171_v15 = vsel %vm1107_vm2, %v1030_v30, %v1139_v59 }
 0x1ca   : > { %v1037_v63 = vpop.f32.mrf.mxu0  ;;  %v2262_v3 = vpop.f32.mrf.mxu1  ;;  %v867_v28 = vadd.f32 %v2254_v52, %v2242_v44  ;;  %v865_v59 = vadd.f32 %v2250_v48, %v2246_v45 }
 0x1cb   : > { %vm1109_vm4 = vcmp.ge.f32.partialorder %v1034_v61, 0.0  ;;  %v1141_v5 = vmul.f32 0.2, %v1034_v61  ;;  %v1172_v7 = vsel %vm1108_vm1, %v1032_v26, %v1140_v60  ;;  %v1038_v39 = vadd.f32 %v1037_v63, %v845_v6 }
 0x1cc   : > { %v1039_v13 = vpop.f32.mrf.mxu0  ;;  %v2266_v14 = vpop.f32.mrf.mxu1  ;;  %v1202_v56 = vpack.c.bf16 %v1172_v7, %v1170_v18  ;;  %v869_v63 = vadd.f32 %v2257_v29, %v2246_v45 }
 0x1cd   : > { %v1040_v35 = vadd.f32 %v1039_v13, %v847_v4  ;;  %v1173_v17 = vsel %vm1109_vm4, %v1034_v61, %v1141_v5  ;;  %v1142_v21 = vmul.f32 0.2, %v1038_v39  ;;  %vm1110_vm7 = vcmp.ge.f32.partialorder %v1038_v39, 0.0 }
 0x1ce   : > { %v1041_v37 = vpop.f32.mrf.mxu0  ;;  %v1203_v36 = vpack.c.bf16 %v1173_v17, %v1171_v15  ;;  %v2269_v38 = vpop.f32.mrf.mxu1 }
 0x1cf   : > { %v1042_v0 = vadd.f32 %v1041_v37, %v849_v34  ;;  %v1143_v20 = vmul.f32 0.2, %v1040_v35  ;;  %vm1111_vm6 = vcmp.ge.f32.partialorder %v1040_v35, 0.0  ;;  %v1174_v16 = vsel %vm1110_vm7, %v1038_v39, %v1142_v21 }
 0x1d0   : > { %v1043_v1 = vpop.f32.mrf.mxu0  ;;  %1385 = vmatprep.mubr.bf16.mxu1 %v1203_v36  ;;  %v2272_v2 = vpop.f32.mrf.mxu1 }
 0x1d1   : > { %vm1112_vm5 = vcmp.ge.f32.partialorder %v1042_v0, 0.0  ;;  %v1144_v10 = vmul.f32 0.2, %v1042_v0  ;;  %v1044_v11 = vadd.f32 %v1043_v1, %v851_v55  ;;  %1386 = vmatmul.mubr.bf16.vlgmr.msra.gmra.mxu1 %v1202_v56  ;;  %v1175_v40 = vsel %vm1111_vm6, %v1040_v35, %v1143_v20 }
 0x1d2   : > { %v1047_v22 = vpop.f32.mrf.mxu0  ;;  %v2274_v23 = vpop.f32.mrf.mxu1  ;;  %v871_v35 = vadd.f32 %v2260_v58, %v2242_v44  ;;  %v877_v56 = vadd.f32 %v2266_v14, %v2242_v44  ;;  %v881_v14 = vadd.f32 %v2272_v2, %v2242_v44 }
 0x1d3   : > { %vm1113_vm8 = vcmp.ge.f32.partialorder %v1044_v11, 0.0  ;;  %v1145_v8 = vmul.f32 0.2, %v1044_v11  ;;  %v1176_v25 = vsel %vm1112_vm5, %v1042_v0, %v1144_v10  ;;  %v1048_v19 = vadd.f32 %v1047_v22, %v855_v9 }
 0x1d4   : > { %v1049_v12 = vpop.f32.mrf.mxu0  ;;  %v2279_v27 = vpop.f32.mrf.mxu1  ;;  %v1204_v53 = vpack.c.bf16 %v1176_v25, %v1174_v16  ;;  %v875_v0 = vadd.f32 %v2262_v3, %v2246_v45  ;;  %v885_v2 = vadd.f32 %v2274_v23, %v2246_v45 }
 0x1d5   : > { %v1050_v33 = vadd.f32 %v1049_v12, %v857_v24  ;;  %v1177_v41 = vsel %vm1113_vm8, %v1044_v11, %v1145_v8  ;;  %v1146_v31 = vmul.f32 0.2, %v1048_v19  ;;  %vm1114_vm11 = vcmp.ge.f32.partialorder %v1048_v19, 0.0 }
 0x1d6   : > { %v1051_v47 = vpop.f32.mrf.mxu0  ;;  %v1205_v49 = vpack.c.bf16 %v1177_v41, %v1175_v40  ;;  %v2285_v30 = vpop.f32.mrf.mxu1  ;;  %v879_v11 = vadd.f32 %v2269_v38, %v2246_v45  ;;  %v887_v16 = vadd.f32 %v2279_v27, %v2242_v44 }
 0x1d7   : > { %v1052_v51 = vadd.f32 %v1051_v47, %v859_v32  ;;  %v1147_v54 = vmul.f32 0.2, %v1050_v33  ;;  %vm1115_vm10 = vcmp.ge.f32.partialorder %v1050_v33, 0.0  ;;  %v1178_v52 = vsel %vm1114_vm11, %v1048_v19, %v1146_v31 }
 0x1d8   : > { %v1053_v42 = vpop.f32.mrf.mxu0  ;;  %1393 = vmatprep.mubr.bf16.mxu1 %v1205_v49  ;;  %v2291_v61 = vpop.f32.mrf.mxu1 }
 0x1d9   : > { %vm1116_vm9 = vcmp.ge.f32.partialorder %v1052_v51, 0.0  ;;  %v1148_v57 = vmul.f32 0.2, %v1052_v51  ;;  %v1054_v43 = vadd.f32 %v1053_v42, %v861_v50  ;;  %1394 = vmatmul.mubr.bf16.gmra.mxu1 %v1204_v53  ;;  %v1179_v5 = vsel %vm1115_vm10, %v1050_v33, %v1147_v54 }
 0x1da   : > { %v1057_v26 = vpop.f32.mrf.mxu0  ;;  %v2297_v18 = vpop.f32.mrf.mxu1  ;;  %v889_v54 = vadd.f32 %v2285_v30, %v2246_v45  ;;  %v891_v27 = vadd.f32 %v2291_v61, %v2242_v44 }
 0x1db   : > { %vm1117_vm12 = vcmp.ge.f32.partialorder %v1054_v43, 0.0  ;;  %v1149_v46 = vmul.f32 0.2, %v1054_v43  ;;  %v1180_v62 = vsel %vm1116_vm9, %v1052_v51, %v1148_v57  ;;  %v1058_v7 = vadd.f32 %v1057_v26, %v865_v59 }
 0x1dc   : > { %v1059_v60 = vpop.f32.mrf.mxu0  ;;  %v1206_v17 = vpack.c.bf16 %v1180_v62, %v1178_v52  ;;  %v896_v20 = vpop.f32.mrf.mxu1  ;;  %v895_v61 = vadd.f32 %v2297_v18, %v2246_v45 }
 0x1dd   : > { %v1060_v4 = vadd.f32 %v1059_v60, %v867_v28  ;;  %v1181_v6 = vsel %vm1117_vm12, %v1054_v43, %v1149_v46  ;;  %v1150_v36 = vmul.f32 0.2, %v1058_v7  ;;  %vm1118_vm15 = vcmp.ge.f32.partialorder %v1058_v7, 0.0 }
 0x1de   : > { %v1061_v13 = vpop.f32.mrf.mxu0  ;;  %v1207_v34 = vpack.c.bf16 %v1181_v6, %v1179_v5  ;;  %v898_v40 = vpop.f32.mrf.mxu1 }
 0x1df   : > { %v1062_v15 = vadd.f32 %v1061_v13, %v869_v63  ;;  %v1151_v39 = vmul.f32 0.2, %v1060_v4  ;;  %vm1119_vm14 = vcmp.ge.f32.partialorder %v1060_v4, 0.0  ;;  %v1182_v25 = vsel %vm1118_vm15, %v1058_v7, %v1150_v36 }
 0x1e0   : > { %v1063_v48 = vpop.f32.mrf.mxu0  ;;  %1401 = vmatprep.mubr.bf16.mxu1 %v1207_v34  ;;  %v900_v51 = vpop.f32.mrf.mxu1  ;;  %v897_v13 = vadd.f32 %v896_v20, %v2242_v44 }
 0x1e1   : > { %vm1120_vm13 = vcmp.ge.f32.partialorder %v1062_v15, 0.0  ;;  %v1152_v37 = vmul.f32 0.2, %v1062_v15  ;;  %v1064_v29 = vadd.f32 %v1063_v48, %v871_v35  ;;  %1402 = vmatmul.mubr.bf16.gmra.mxu1 %v1206_v17  ;;  %v1183_v22 = vsel %vm1119_vm14, %v1060_v4, %v1151_v39 }
 0x1e2   : > { %v1067_v55 = vpop.f32.mrf.mxu0  ;;  %v904_v63 = vpop.f32.mrf.mxu1  ;;  %v899_v17 = vadd.f32 %v898_v40, %v2246_v45 }
 0x1e3   : > { %vm1121_vm0 = vcmp.ge.f32.partialorder %v1064_v29, 0.0  ;;  %v1153_v58 = vmul.f32 0.2, %v1064_v29  ;;  %v1184_v10 = vsel %vm1120_vm13, %v1062_v15, %v1152_v37  ;;  %v1068_v8 = vadd.f32 %v1067_v55, %v875_v0 }
 0x1e4   : > { %v1069_v1 = vpop.f32.mrf.mxu0  ;;  %v1208_v33 = vpack.c.bf16 %v1184_v10, %v1182_v25  ;;  %v906_v52 = vpop.f32.mrf.mxu1 }
 0x1e5   : > { %v1070_v21 = vadd.f32 %v1069_v1, %v877_v56  ;;  %v1185_v24 = vsel %vm1121_vm0, %v1064_v29, %v1153_v58  ;;  %v1154_v38 = vmul.f32 0.2, %v1068_v8  ;;  %vm1122_vm3 = vcmp.ge.f32.partialorder %v1068_v8, 0.0 }
 0x1e6   : > { %v1071_v9 = vpop.f32.mrf.mxu0  ;;  %v1209_v12 = vpack.c.bf16 %v1185_v24, %v1183_v22  ;;  %v901_v58 = vadd.f32 %v900_v51, %v2242_v44  ;;  %v908_v20 = vpop.f32.mrf.mxu1 }
 0x1e7   : > { %v1072_v32 = vadd.f32 %v1071_v9, %v879_v11  ;;  %v1155_v41 = vmul.f32 0.2, %v1070_v21  ;;  %vm1123_vm2 = vcmp.ge.f32.partialorder %v1070_v21, 0.0  ;;  %v1186_v59 = vsel %vm1122_vm3, %v1068_v8, %v1154_v38 }
 0x1e8   : > { %v1073_v3 = vpop.f32.mrf.mxu0  ;;  %1409 = vmatprep.mubr.bf16.mxu1 %v1209_v12  ;;  %v907_v8 = vadd.f32 %v906_v52, %v2242_v44  ;;  %v905_v12 = vadd.f32 %v904_v63, %v2246_v45  ;;  %v910_v25 = vpop.f32.mrf.mxu1 }
 0x1e9   : > { %vm1124_vm1 = vcmp.ge.f32.partialorder %v1072_v32, 0.0  ;;  %v1156_v19 = vmul.f32 0.2, %v1072_v32  ;;  %v1074_v47 = vadd.f32 %v1073_v3, %v881_v14  ;;  %1410 = vmatmul.mubr.bf16.gmra.mxu1 %v1208_v33  ;;  %v1187_v43 = vsel %vm1123_vm2, %v1070_v21, %v1155_v41 }
 0x1ea   : > { %v1077_v49 = vpop.f32.mrf.mxu0  ;;  %v909_v33 = vadd.f32 %v908_v20, %v2246_v45 }
 0x1eb   : > { %vm1125_vm4 = vcmp.ge.f32.partialorder %v1074_v47, 0.0  ;;  %v1157_v50 = vmul.f32 0.2, %v1074_v47  ;;  %v1188_v42 = vsel %vm1124_vm1, %v1072_v32, %v1156_v19  ;;  %v1078_v26 = vadd.f32 %v1077_v49, %v885_v2 }
 0x1ec   : > { %v1079_v53 = vpop.f32.mrf.mxu0  ;;  %v1210_v62 = vpack.c.bf16 %v1188_v42, %v1186_v59 }
 0x1ed   : > { %v1080_v57 = vadd.f32 %v1079_v53, %v887_v16  ;;  %v1189_v31 = vsel %vm1125_vm4, %v1074_v47, %v1157_v50  ;;  %v1158_v30 = vmul.f32 0.2, %v1078_v26  ;;  %vm1126_vm7 = vcmp.ge.f32.partialorder %v1078_v26, 0.0 }
 0x1ee   : > { %v1081_v28 = vpop.f32.mrf.mxu0  ;;  %v1211_v46 = vpack.c.bf16 %v1189_v31, %v1187_v43  ;;  %v911_v16 = vadd.f32 %v910_v25, %v2242_v44 }
 0x1ef   : > { %v1082_v60 = vadd.f32 %v1081_v28, %v889_v54  ;;  %v1159_v4 = vmul.f32 0.2, %v1080_v57  ;;  %vm1127_vm6 = vcmp.ge.f32.partialorder %v1080_v57, 0.0  ;;  %v1190_v56 = vsel %vm1126_vm7, %v1078_v26, %v1158_v30 }
 0x1f0   : > { %v1083_v23 = vpop.f32.mrf.mxu0  ;;  %1417 = vmatprep.mubr.bf16.mxu1 %v1211_v46 }
 0x1f1   : > { %vm1128_vm5 = vcmp.ge.f32.partialorder %v1082_v60, 0.0  ;;  %v1160_v5 = vmul.f32 0.2, %v1082_v60  ;;  %v1084_v6 = vadd.f32 %v1083_v23, %v891_v27  ;;  %1418 = vmatmul.mubr.bf16.gmra.mxu1 %v1210_v62  ;;  %v1191_v39 = vsel %vm1127_vm6, %v1080_v57, %v1159_v4  ;;  %v2327_v27 = vld [vmem:[%s2378_s7] ss:$0 sm:$0xff] }
 0x1f2   : > { %v1087_v7 = vpop.f32.mrf.mxu0 }
 0x1f3   : > { %vm1129_vm8 = vcmp.ge.f32.partialorder %v1084_v6, 0.0  ;;  %v1161_v34 = vmul.f32 0.2, %v1084_v6  ;;  %v1192_v15 = vsel %vm1128_vm5, %v1082_v60, %v1160_v5  ;;  %v1088_v29 = vadd.f32 %v1087_v7, %v895_v61 }
 0x1f4   : > { %v1089_v35 = vpop.f32.mrf.mxu0  ;;  %v1212_v1 = vpack.c.bf16 %v1192_v15, %v1190_v56 }
 0x1f5   : > { %v1090_v48 = vadd.f32 %v1089_v35, %v897_v13  ;;  %v1193_v37 = vsel %vm1129_vm8, %v1084_v6, %v1161_v34  ;;  %v1162_v22 = vmul.f32 0.2, %v1088_v29  ;;  %vm1130_vm11 = vcmp.ge.f32.partialorder %v1088_v29, 0.0 }
 0x1f6   : > { %v1091_v36 = vpop.f32.mrf.mxu0  ;;  %v1213_v55 = vpack.c.bf16 %v1193_v37, %v1191_v39 }
 0x1f7   : > { %v1092_v0 = vadd.f32 %v1091_v36, %v899_v17  ;;  %v1163_v18 = vmul.f32 0.2, %v1090_v48  ;;  %vm1131_vm10 = vcmp.ge.f32.partialorder %v1090_v48, 0.0  ;;  %v1194_v49 = vsel %vm1130_vm11, %v1088_v29, %v1162_v22 }
 0x1f8   : > { %v1093_v10 = vpop.f32.mrf.mxu0  ;;  %1425 = vmatprep.mubr.bf16.mxu1 %v1213_v55 }
 0x1f9   : > { %vm1132_vm9 = vcmp.ge.f32.partialorder %v1092_v0, 0.0  ;;  %v1164_v11 = vmul.f32 0.2, %v1092_v0  ;;  %v1094_v21 = vadd.f32 %v1093_v10, %v901_v58  ;;  %1426 = vmatmul.mubr.bf16.gmra.mxu1 %v1212_v1  ;;  %v1195_v3 = vsel %vm1131_vm10, %v1090_v48, %v1163_v18 }
 0x1fa   : > { %v1097_v24 = vpop.f32.mrf.mxu0 }
 0x1fb   : > { %vm1133_vm12 = vcmp.ge.f32.partialorder %v1094_v21, 0.0  ;;  %v1165_v9 = vmul.f32 0.2, %v1094_v21  ;;  %v1196_v32 = vsel %vm1132_vm9, %v1092_v0, %v1164_v11  ;;  %v1098_v19 = vadd.f32 %v1097_v24, %v905_v12 }
 0x1fc   : > { %v1099_v14 = vpop.f32.mrf.mxu0  ;;  %v1214_v2 = vpack.c.bf16 %v1196_v32, %v1194_v49 }
 0x1fd   : > { %v1100_v40 = vadd.f32 %v1099_v14, %v907_v8  ;;  %v1197_v41 = vsel %vm1133_vm12, %v1094_v21, %v1165_v9  ;;  %v1166_v57 = vmul.f32 0.2, %v1098_v19  ;;  %vm1134_vm15 = vcmp.ge.f32.partialorder %v1098_v19, 0.0 }
 0x1fe   : > { %v1101_v47 = vpop.f32.mrf.mxu0  ;;  %v1215_v38 = vpack.c.bf16 %v1197_v41, %v1195_v3 }
 0x1ff   : > { %v1102_v50 = vadd.f32 %v1101_v47, %v909_v33  ;;  %v1167_v53 = vmul.f32 0.2, %v1100_v40  ;;  %vm1135_vm14 = vcmp.ge.f32.partialorder %v1100_v40, 0.0  ;;  %v1198_v44 = vsel %vm1134_vm15, %v1098_v19, %v1166_v57 }
 0x200   : > { %v1103_v51 = vpop.f32.mrf.mxu0  ;;  %1433 = vmatprep.mubr.bf16.mxu1 %v1215_v38 }
 0x201   : > { %vm1136_vm13 = vcmp.ge.f32.partialorder %v1102_v50, 0.0  ;;  %v1168_v42 = vmul.f32 0.2, %v1102_v50  ;;  %v1104_v54 = vadd.f32 %v1103_v51, %v911_v16  ;;  %1434 = vmatmul.mubr.bf16.gmra.mxu1 %v1214_v2  ;;  %v1199_v31 = vsel %vm1135_vm14, %v1100_v40, %v1167_v53 }
 0x203   : > { %vm1137_vm0 = vcmp.ge.f32.partialorder %v1104_v54, 0.0  ;;  %v1169_v45 = vmul.f32 0.2, %v1104_v54  ;;  %v1200_v43 = vsel %vm1136_vm13, %v1102_v50, %v1168_v42 }
 0x204   : > { %v1216_v46 = vpack.c.bf16 %v1200_v43, %v1198_v44 }
 0x205   : > { %v1201_v26 = vsel %vm1137_vm0, %v1104_v54, %v1169_v45 }
 0x206   : > { %v1217_v28 = vpack.c.bf16 %v1201_v26, %v1199_v31 }
 0x208   : > { %1441 = vmatprep.mubr.bf16.mxu1 %v1217_v28 }
 0x209   : > { %1442 = vmatmul.mubr.bf16.gmra.mxu1 %v1216_v46 }
 0x291   : > { %v1630_v59 = vpop.f32.mrf.mxu1 }
 0x293   : > { %v1631_v60 = vpop.f32.mrf.mxu1 }
 0x294   : > { %v1632_v62 = vadd.f32 %v1631_v60, %v1630_v59 }
 0x295   : > { %v1633_v63 = vpop.f32.mrf.mxu1 }
 0x296   : > { %v1388_v23 = vadd.f32 %v1632_v62, %v2327_v27 }
 0x297   : > { %v1634_v4 = vpop.f32.mrf.mxu1 }
 0x298   : > { %1450 = vst [vmem:[%s2334_s16] sm:$0xff] %v1388_v23  ;;  %v1635_v5 = vadd.f32 %v1634_v4, %v1633_v63 }
 0x299   : > { %v1636_v6 = vpop.f32.mrf.mxu1 }
 0x29a   : > { %v1391_v30 = vadd.f32 %v1635_v5, %v2327_v27 }
 0x29b   : > { %v1637_v7 = vpop.f32.mrf.mxu1 }
 0x29c   : > { %1451 = vst [vmem:[%s2334_s16 + $0x8] sm:$0xff] %v1391_v30  ;;  %v1638_v13 = vadd.f32 %v1637_v7, %v1636_v6 }
 0x29d   : > { %v1639_v34 = vpop.f32.mrf.mxu1 }
 0x29e   : > { %v1396_v61 = vadd.f32 %v1638_v13, %v2327_v27 }
 0x29f   : > { %v1640_v52 = vpop.f32.mrf.mxu1 }
 0x2a0   : > { %1452 = vst [vmem:[%s2334_s16 + $0x10] sm:$0xff] %v1396_v61  ;;  %v1641_v35 = vadd.f32 %v1640_v52, %v1639_v34 }
 0x2a1   : > { %v1642_v15 = vpop.f32.mrf.mxu1 }
 0x2a2   : > { %v1399_v17 = vadd.f32 %v1641_v35, %v2327_v27 }
 0x2a3   : > { %v1643_v48 = vpop.f32.mrf.mxu1 }
 0x2a4   : > { %1453 = vst [vmem:[%s2334_s16 + $0x18] sm:$0xff] %v1399_v17  ;;  %v1644_v39 = vadd.f32 %v1643_v48, %v1642_v15 }
 0x2a5   : > { %v1645_v37 = vpop.f32.mrf.mxu1 }
 0x2a6   : > { %v1404_v29 = vadd.f32 %v1644_v39, %v2327_v27 }
 0x2a7   : > { %v1646_v36 = vpop.f32.mrf.mxu1 }
 0x2a8   : > { %1454 = vst [vmem:[%s2334_s16 + $0x20] sm:$0xff] %v1404_v29  ;;  %v1647_v55 = vadd.f32 %v1646_v36, %v1645_v37 }
 0x2a9   : > { %v1648_v56 = vpop.f32.mrf.mxu1 }
 0x2aa   : > { %v1407_v58 = vadd.f32 %v1647_v55, %v2327_v27 }
 0x2ab   : > { %v1649_v0 = vpop.f32.mrf.mxu1 }
 0x2ac   : > { %1455 = vst [vmem:[%s2334_s16 + $0x28] sm:$0xff] %v1407_v58  ;;  %v1650_v1 = vadd.f32 %v1649_v0, %v1648_v56 }
 0x2ad   : > { %v1651_v20 = vpop.f32.mrf.mxu1 }
 0x2ae   : > { %v1412_v10 = vadd.f32 %v1650_v1, %v2327_v27 }
 0x2af   : > { %v1652_v18 = vpop.f32.mrf.mxu1 }
 0x2b0   : > { %1456 = vst [vmem:[%s2334_s16 + $0x30] sm:$0xff] %v1412_v10  ;;  %v1653_v11 = vadd.f32 %v1652_v18, %v1651_v20 }
 0x2b1   : > { %v1654_v21 = vpop.f32.mrf.mxu1 }
 0x2b2   : > { %v1415_v22 = vadd.f32 %v1653_v11, %v2327_v27 }
 0x2b3   : > { %v1655_v24 = vpop.f32.mrf.mxu1 }
 0x2b4   : > { %1457 = vst [vmem:[%s2334_s16 + $0x38] sm:$0xff] %v1415_v22  ;;  %v1656_v8 = vadd.f32 %v1655_v24, %v1654_v21 }
 0x2b5   : > { %v1657_v9 = vpop.f32.mrf.mxu1 }
 0x2b6   : > { %v1420_v12 = vadd.f32 %v1656_v8, %v2327_v27 }
 0x2b7   : > { %v1658_v25 = vpop.f32.mrf.mxu1 }
 0x2b8   : > { %1458 = vst [vmem:[%s2334_s16 + $0x40] sm:$0xff] %v1420_v12  ;;  %v1659_v14 = vadd.f32 %v1658_v25, %v1657_v9 }
 0x2b9   : > { %v1660_v32 = vpop.f32.mrf.mxu1 }
 0x2ba   : > { %v1423_v33 = vadd.f32 %v1659_v14, %v2327_v27 }
 0x2bb   : > { %v1661_v40 = vpop.f32.mrf.mxu1 }
 0x2bc   : > { %1459 = vst [vmem:[%s2334_s16 + $0x48] sm:$0xff] %v1423_v33  ;;  %v1662_v3 = vadd.f32 %v1661_v40, %v1660_v32 }
 0x2bd   : > { %v1663_v41 = vpop.f32.mrf.mxu1 }
 0x2be   : > { %v1428_v19 = vadd.f32 %v1662_v3, %v2327_v27 }
 0x2bf   : > { %v1664_v47 = vpop.f32.mrf.mxu1 }
 0x2c0   : > { %1460 = vst [vmem:[%s2334_s16 + $0x50] sm:$0xff] %v1428_v19  ;;  %v1665_v38 = vadd.f32 %v1664_v47, %v1663_v41 }
 0x2c1   : > { %v1666_v49 = vpop.f32.mrf.mxu1 }
 0x2c2   : > { %v1431_v16 = vadd.f32 %v1665_v38, %v2327_v27 }
 0x2c3   : > { %v1667_v50 = vpop.f32.mrf.mxu1 }
 0x2c4   : > { %1461 = vst [vmem:[%s2334_s16 + $0x58] sm:$0xff] %v1431_v16  ;;  %v1668_v2 = vadd.f32 %v1667_v50, %v1666_v49 }
 0x2c5   : > { %v1669_v51 = vpop.f32.mrf.mxu1 }
 0x2c6   : > { %v1436_v53 = vadd.f32 %v1668_v2, %v2327_v27 }
 0x2c7   : > { %v1670_v42 = vpop.f32.mrf.mxu1 }
 0x2c8   : > { %1462 = vst [vmem:[%s2334_s16 + $0x60] sm:$0xff] %v1436_v53  ;;  %v1671_v54 = vadd.f32 %v1670_v42, %v1669_v51 }
 0x2c9   : > { %v1672_v57 = vpop.f32.mrf.mxu1 }
 0x2ca   : > { %v1439_v45 = vadd.f32 %v1671_v54, %v2327_v27 }
 0x2cb   : > { %v1673_v43 = vpop.f32.mrf.mxu1 }
 0x2cc   : > { %1463 = vst [vmem:[%s2334_s16 + $0x68] sm:$0xff] %v1439_v45  ;;  %v1674_v31 = vadd.f32 %v1673_v43, %v1672_v57 }
 0x2cd   : > { %v1675_v26 = vpop.f32.mrf.mxu1 }
 0x2ce   : > { %v1444_v28 = vadd.f32 %v1674_v31, %v2327_v27 }
 0x2cf   : > { %v1676_v44 = vpop.f32.mrf.mxu1 }
 0x2d0   : > { %1464 = vst [vmem:[%s2334_s16 + $0x70] sm:$0xff] %v1444_v28  ;;  %v1677_v46 = vadd.f32 %v1676_v44, %v1675_v26 }
 0x2d2   : > { %v1447_v59 = vadd.f32 %v1677_v46, %v2327_v27 }
 0x2d4   : > { %1465 = vst [vmem:[%s2334_s16 + $0x78] sm:$0xff] %v1447_v59 }
 0x2d5 PF: > { %s18_s27 = sadd.s32 1, %s1813_s27  }
 0x2d6   : > { %p15_p4 = scmp.ge.s32.totalorder %s18_s27, 6  }
 0x2d8   :  { %17 = sbr.rel (!%p15_p4) target bundleno = 1 (0x1), region = 82 }

</bundles_post_ra>
